<compile_context>
chip_gen: v7x
topology: tpu7x:2x2x1
jax: 0.10.0
libtpu: 0.0.40
codegen_flags: <defaults>
</compile_context>

<pallas_src>
import jax
import jax.numpy as jnp
from jax.experimental import pallas as pl
from jax.experimental.pallas import tpu as pltpu


def _round_up(n, m):
    return (n + m - 1) // m * m


def _quality_regressor_kernel(x_ref, w1_ref, b1_ref, w2_ref, b2_ref,
                              w3_ref, b3_ref, out_ref):
    """One batch tile: x_ref (TM, F) -> out_ref (TM, 1)."""
    x = x_ref[...].astype(jnp.bfloat16)                        # no-op if x is already bf16

    # Layer 1: (TM, F) @ (F, H) — MXU-native (W1 pre-transposed), f32 accumulation.
    h1 = jnp.dot(x, w1_ref[...], preferred_element_type=jnp.float32)       # (TM, H)
    h1 = jnp.maximum(h1 + b1_ref[...], 0.0)
    # Dropout(0.5): identity at inference.

    # Layer 2: (TM, H) @ (H, H2) — MXU-native (W2 pre-transposed), f32 accumulation.
    h2 = jnp.dot(h1.astype(jnp.bfloat16), w2_ref[...],
                 preferred_element_type=jnp.float32)                        # (TM, H2)
    h2 = jnp.maximum(h2 + b2_ref[...], 0.0)
    # Dropout(0.5): identity at inference.

    # Layer 3 (out_features = 1): tiny f32 MXU matmul, keeps the XLU idle.
    logits = jnp.dot(h2, w3_ref[...], preferred_element_type=jnp.float32)   # (TM, 1)
    logits = logits + b3_ref[...]
    out_ref[...] = jax.nn.sigmoid(logits).astype(out_ref.dtype)


def quality_regressor(x, kernel_params, *, block_b=1024):
    """x: [B, feat_dim] float32/bfloat16 -> [B] float32 (matches torch .squeeze(-1))."""
    w1t, b1, w2t, b2, w3t, b3 = kernel_params
    B, feat_dim = x.shape
    H = w1t.shape[1]
    H2 = w2t.shape[1]
    xbytes = x.dtype.itemsize

    # ---------------- batch tile selection ----------------
    b128 = _round_up(B, 128)
    tm = min(_round_up(block_b, 128), b128)

    # Keep the double-buffered x stream under ~24 MiB so weights + h1/h2
    # intermediates + headroom fit v7x's 64 MiB physical VMEM per TensorCore.
    vmem_x_budget = 24 * 1024 * 1024
    tm_cap = max(128, (vmem_x_budget // (2 * feat_dim * xbytes)) // 128 * 128)
    tm = min(tm, tm_cap)

    # Guarantee >= 2 grid steps when the batch allows it, so the "parallel"
    # batch axis can be sharded across both TensorCores on v7x.
    if b128 >= 256:
        tm = min(tm, _round_up(b128 // 2, 128))

    if _round_up(B, 8) <= tm:
        # Tiny batch: one block covering the full (sublane-aligned) array, so no
        # (8,128) block constraints and no ragged edge at all.
        tm = _round_up(B, 8)
        grid = 1
    else:
        grid = pl.cdiv(B, tm)
    b_cover = grid * tm

    if grid == 1 and x.shape[0] != tm:
        # Negligible copy: only taken when the whole batch fits one small tile.
        x = jnp.pad(x, ((0, tm - x.shape[0]), (0, 0)))
    # For grid > 1 and B % tm != 0 the last x block is ragged; Pallas clamps the
    # DMA, the garbage rows only affect output rows >= B (sliced off below), and
    # no full-array HBM pad-copy is ever issued.

    # ---------------- VMEM / cost hints ----------------
    w_bytes = sum(int(p.size) * p.dtype.itemsize for p in kernel_params)
    interm_bytes = tm * (H + H2) * 6 + tm * 8            # f32 h1/h2 + bf16 copy + logits
    need = 2 * tm * feat_dim * xbytes + 2 * w_bytes + interm_bytes + (4 << 20)
    vmem_limit = int(min(max(need, 16 << 20), 48 << 20))  # 48 MiB is safe on v7x (64 MiB phys)

    flops = 2 * B * (feat_dim * H + H * H2 + H2)
    bytes_accessed = B * feat_dim * xbytes + w_bytes + B * 4
    cost = pl.CostEstimate(flops=flops, transcendentals=B,
                           bytes_accessed=bytes_accessed)

    const = lambda i: (0, 0)  # weights/biases: resident in VMEM across all grid steps

    out = pl.pallas_call(
        _quality_regressor_kernel,
        out_shape=jax.ShapeDtypeStruct((b_cover, 1), jnp.float32),
        grid=(grid,),
        in_specs=[
            pl.BlockSpec((tm, feat_dim), lambda i: (i, 0)),   # streamed x tiles
            pl.BlockSpec(w1t.shape, const),                   # W1^T (F, H)  bf16
            pl.BlockSpec(b1.shape, const),                    # b1   (1, H)  f32
            pl.BlockSpec(w2t.shape, const),                   # W2^T (H, H2) bf16
            pl.BlockSpec(b2.shape, const),                    # b2   (1, H2) f32
            pl.BlockSpec(w3t.shape, const),                   # W3^T (H2, 1) f32
            pl.BlockSpec(b3.shape, const),                    # b3   (1, 1)  f32
        ],
        out_specs=pl.BlockSpec((tm, 1), lambda i: (i, 0)),
        compiler_params=pltpu.CompilerParams(
            dimension_semantics=("parallel",),                # 2 TCs on v7x
            vmem_limit_bytes=vmem_limit),
        cost_estimate=cost,
    )(x, w1t, b1, w2t, b2, w3t, b3)

    return out[:B, 0]


def init_params(key, feat_dim, hidden_dim=512):
    """Synthetic parameters in PyTorch nn.Linear layout: weight [out, in], bias [out]."""
    h2 = hidden_dim // 2
    ks = jax.random.split(key, 6)
    w1 = jax.random.normal(ks[0], (hidden_dim, feat_dim), jnp.float32) * 0.05
    b1 = jax.random.normal(ks[1], (hidden_dim,), jnp.float32) * 0.01
    w2 = jax.random.normal(ks[2], (h2, hidden_dim), jnp.float32) * 0.05
    b2 = jax.random.normal(ks[3], (h2,), jnp.float32) * 0.01
    w3 = jax.random.normal(ks[4], (1, h2), jnp.float32) * 0.05
    b3 = jax.random.normal(ks[5], (1,), jnp.float32) * 0.01
    return w1, b1, w2, b2, w3, b3


def prepare_params(torch_params):
    """Convert PyTorch-layout params to the kernel's MXU-native, resident-VMEM layout."""
    w1, b1, w2, b2, w3, b3 = torch_params
    return (
        jnp.asarray(w1).T.astype(jnp.bfloat16),            # (F, H)   bf16 MXU rhs
        jnp.asarray(b1).reshape(1, -1).astype(jnp.float32),  # (1, H)
        jnp.asarray(w2).T.astype(jnp.bfloat16),            # (H, H2)  bf16 MXU rhs
        jnp.asarray(b2).reshape(1, -1).astype(jnp.float32),  # (1, H2)
        jnp.asarray(w3).T.astype(jnp.float32),              # (H2, 1)  f32 (tiny final matmul)
        jnp.asarray(b3).reshape(1, 1).astype(jnp.float32),   # (1, 1)
    )


if __name__ == "__main__":
    key = jax.random.PRNGKey(0)
    B, FEAT_DIM, HIDDEN_DIM = 8, 32, 32   # small shapes consistent with the module

    k_x, k_p = jax.random.split(key)
    x = jax.random.normal(k_x, (B, FEAT_DIM), jnp.float32)
    torch_params = init_params(k_p, FEAT_DIM, HIDDEN_DIM)
    kernel_params = prepare_params(torch_params)

    y = quality_regressor(x, kernel_params)
    y = jax.block_until_ready(y)

    # Pure-JAX f32 reference (eval-mode dropout = identity).
    w1, b1, w2, b2, w3, b3 = torch_params
    h1 = jnp.maximum(x @ w1.T + b1, 0.0)
    h2 = jnp.maximum(h1 @ w2.T + b2, 0.0)
    ref = jax.nn.sigmoid(h2 @ w3.T + b3)[:, 0]

    assert y.shape == (B,)
    # bf16 MXU operands -> allow ~1e-2-level differences vs the pure-f32 reference.
    assert jnp.allclose(y, ref, atol=2e-2), "mismatch vs. reference"

    print("KERNEL_OK")
</pallas_src>

<mosaic_0001>
module attributes {stable_mosaic.version = 11 : i64} {
  func.func @_quality_regressor_kernel(%arg0: i32, %arg1: memref<8x32xf32, #tpu.memory_space<vmem>>, %arg2: memref<32x32xbf16, #tpu.memory_space<vmem>>, %arg3: memref<1x32xf32, #tpu.memory_space<vmem>>, %arg4: memref<32x16xbf16, #tpu.memory_space<vmem>>, %arg5: memref<1x16xf32, #tpu.memory_space<vmem>>, %arg6: memref<16x1xf32, #tpu.memory_space<vmem>>, %arg7: memref<1x1xf32, #tpu.memory_space<vmem>>, %arg8: memref<8x1xf32, #tpu.memory_space<vmem>>) attributes {dimension_semantics = [#tpu.dimension_semantics<parallel>], iteration_bounds = array<i64: 1>, scalar_prefetch = 0 : i64, scratch_operands = 0 : i64, tpu.core_type = #tpu.core_type<tc>, window_params = [{transform_indices = @transform_0, window_bounds = array<i64: 8, 32>}, {pipeline_mode = #tpu.pipeline_mode<synchronous>, transform_indices = @transform_1, window_bounds = array<i64: 32, 32>}, {pipeline_mode = #tpu.pipeline_mode<synchronous>, transform_indices = @transform_2, window_bounds = array<i64: 1, 32>}, {pipeline_mode = #tpu.pipeline_mode<synchronous>, transform_indices = @transform_3, window_bounds = array<i64: 32, 16>}, {pipeline_mode = #tpu.pipeline_mode<synchronous>, transform_indices = @transform_4, window_bounds = array<i64: 1, 16>}, {pipeline_mode = #tpu.pipeline_mode<synchronous>, transform_indices = @transform_5, window_bounds = array<i64: 16, 1>}, {pipeline_mode = #tpu.pipeline_mode<synchronous>, transform_indices = @transform_6, window_bounds = array<i64: 1, 1>}, {transform_indices = @transform_7, window_bounds = array<i64: 8, 1>}]} {
    %c0 = arith.constant 0 : index
    %c0_0 = arith.constant 0 : index
    %0 = vector.load %arg1[%c0, %c0_0] : memref<8x32xf32, #tpu.memory_space<vmem>>, vector<8x32xf32>
    %1 = arith.truncf %0 : vector<8x32xf32> to vector<8x32xbf16>
    %c0_1 = arith.constant 0 : index
    %c0_2 = arith.constant 0 : index
    %2 = vector.load %arg2[%c0_1, %c0_2] : memref<32x32xbf16, #tpu.memory_space<vmem>>, vector<32x32xbf16>
    %cst = arith.constant dense<0.000000e+00> : vector<8x32xf32>
    %3 = tpu.matmul %1, %2, %cst {dimension_numbers = #tpu.dot_dimension_numbers<[1], [0], [0], [1], [0, 0, 1, 1], [], []>} : vector<8x32xbf16>, vector<32x32xbf16>, vector<8x32xf32> -> vector<8x32xf32>
    %c0_3 = arith.constant 0 : index
    %c0_4 = arith.constant 0 : index
    %4 = vector.load %arg3[%c0_3, %c0_4] : memref<1x32xf32, #tpu.memory_space<vmem>>, vector<1x32xf32>
    %5 = vector.broadcast %4 : vector<1x32xf32> to vector<8x32xf32>
    %6 = arith.addf %3, %5 : vector<8x32xf32>
    %cst_5 = arith.constant 0.000000e+00 : f32
    %7 = vector.broadcast %cst_5 : f32 to vector<8x32xf32>
    %8 = arith.maximumf %6, %7 : vector<8x32xf32>
    %9 = arith.truncf %8 : vector<8x32xf32> to vector<8x32xbf16>
    %c0_6 = arith.constant 0 : index
    %c0_7 = arith.constant 0 : index
    %10 = vector.load %arg4[%c0_6, %c0_7] : memref<32x16xbf16, #tpu.memory_space<vmem>>, vector<32x16xbf16>
    %cst_8 = arith.constant dense<0.000000e+00> : vector<8x16xf32>
    %11 = tpu.matmul %9, %10, %cst_8 {dimension_numbers = #tpu.dot_dimension_numbers<[1], [0], [0], [1], [0, 0, 1, 1], [], []>} : vector<8x32xbf16>, vector<32x16xbf16>, vector<8x16xf32> -> vector<8x16xf32>
    %c0_9 = arith.constant 0 : index
    %c0_10 = arith.constant 0 : index
    %12 = vector.load %arg5[%c0_9, %c0_10] : memref<1x16xf32, #tpu.memory_space<vmem>>, vector<1x16xf32>
    %13 = vector.broadcast %12 : vector<1x16xf32> to vector<8x16xf32>
    %14 = arith.addf %11, %13 : vector<8x16xf32>
    %cst_11 = arith.constant 0.000000e+00 : f32
    %15 = vector.broadcast %cst_11 : f32 to vector<8x16xf32>
    %16 = arith.maximumf %14, %15 : vector<8x16xf32>
    %c0_12 = arith.constant 0 : index
    %c0_13 = arith.constant 0 : index
    %17 = vector.load %arg6[%c0_12, %c0_13] : memref<16x1xf32, #tpu.memory_space<vmem>>, vector<16x1xf32>
    %cst_14 = arith.constant dense<0.000000e+00> : vector<8x1xf32>
    %18 = tpu.matmul %16, %17, %cst_14 {dimension_numbers = #tpu.dot_dimension_numbers<[1], [0], [0], [1], [0, 0, 1, 1], [], []>} : vector<8x16xf32>, vector<16x1xf32>, vector<8x1xf32> -> vector<8x1xf32>
    %c0_15 = arith.constant 0 : index
    %c0_16 = arith.constant 0 : index
    %19 = vector.load %arg7[%c0_15, %c0_16] : memref<1x1xf32, #tpu.memory_space<vmem>>, vector<1x1xf32>
    %20 = vector.broadcast %19 : vector<1x1xf32> to vector<8x1xf32>
    %21 = arith.addf %18, %20 : vector<8x1xf32>
    %22 = arith.negf %21 : vector<8x1xf32>
    %23 = math.exp %22 : vector<8x1xf32>
    %cst_17 = arith.constant 1.000000e+00 : f32
    %24 = vector.broadcast %cst_17 : f32 to vector<8x1xf32>
    %25 = arith.addf %24, %23 : vector<8x1xf32>
    %26 = arith.divf %24, %25 : vector<8x1xf32>
    %c0_18 = arith.constant 0 : index
    %c0_19 = arith.constant 0 : index
    %27 = vector.load %arg8[%c0_18, %c0_19] : memref<8x1xf32, #tpu.memory_space<vmem>>, vector<8x1xf32>
    tpu.vector_store %arg8[%c0_18, %c0_19], %26 {strides = array<i32>} : memref<8x1xf32, #tpu.memory_space<vmem>>, vector<8x1xf32>,
    return
  }
  func.func @transform_0(%arg0: i32) -> (i32, i32) {
    %c0_i32 = arith.constant 0 : i32
    %c0_i32_0 = arith.constant 0 : i32
    return %arg0, %c0_i32 : i32, i32
  }
  func.func @transform_1(%arg0: i32) -> (i32, i32) {
    %c0_i32 = arith.constant 0 : i32
    %c0_i32_0 = arith.constant 0 : i32
    %c0_i32_1 = arith.constant 0 : i32
    return %c0_i32, %c0_i32_0 : i32, i32
  }
  func.func @transform_2(%arg0: i32) -> (i32, i32) {
    %c0_i32 = arith.constant 0 : i32
    %c0_i32_0 = arith.constant 0 : i32
    %c0_i32_1 = arith.constant 0 : i32
    return %c0_i32, %c0_i32_0 : i32, i32
  }
  func.func @transform_3(%arg0: i32) -> (i32, i32) {
    %c0_i32 = arith.constant 0 : i32
    %c0_i32_0 = arith.constant 0 : i32
    %c0_i32_1 = arith.constant 0 : i32
    return %c0_i32, %c0_i32_0 : i32, i32
  }
  func.func @transform_4(%arg0: i32) -> (i32, i32) {
    %c0_i32 = arith.constant 0 : i32
    %c0_i32_0 = arith.constant 0 : i32
    %c0_i32_1 = arith.constant 0 : i32
    return %c0_i32, %c0_i32_0 : i32, i32
  }
  func.func @transform_5(%arg0: i32) -> (i32, i32) {
    %c0_i32 = arith.constant 0 : i32
    %c0_i32_0 = arith.constant 0 : i32
    %c0_i32_1 = arith.constant 0 : i32
    return %c0_i32, %c0_i32_0 : i32, i32
  }
  func.func @transform_6(%arg0: i32) -> (i32, i32) {
    %c0_i32 = arith.constant 0 : i32
    %c0_i32_0 = arith.constant 0 : i32
    %c0_i32_1 = arith.constant 0 : i32
    return %c0_i32, %c0_i32_0 : i32, i32
  }
  func.func @transform_7(%arg0: i32) -> (i32, i32) {
    %c0_i32 = arith.constant 0 : i32
    %c0_i32_0 = arith.constant 0 : i32
    return %arg0, %c0_i32 : i32, i32
  }
}

</mosaic_0001>

<bundles_post_ra>
// kernel: tpu_custom_call.1
= control target key start
LH: loop header
LB: loop body
LE: loop exit
PB: predicated region body
PF: predicated region fallthrough
CT: control target
= control target key end

     0   :  { %v319_v0 = vmov 0.0   ;;  %vm320_vm0 = vmmov 0   ;;  %vm54_vm1 = vcmask 261120   ;;  %v321_v7 = vmov 0.0|0.0   ;;  %s397_s1 = inlined_call_operand.vmem [shape: bf16[32,32], index: 1, kind: input, shape index: {}]   ;;  %s398_s0 = inlined_call_operand.vmem [shape: f32[8,32], index: 0, kind: input, shape index: {}]   ;;  %s399_s3 = inlined_call_operand.vmem [shape: bf16[32,16], index: 3, kind: input, shape index: {}]   ;;  %s400_s5 = inlined_call_operand.vmem [shape: f32[16,1], index: 5, kind: input, shape index: {}]   ;;  %s401_s2 = inlined_call_operand.vmem [shape: f32[1,32], index: 2, kind: input, shape index: {}]   ;;  %s402_s6 = inlined_call_operand.<no memory space> [shape: f32[1,1], index: 6, kind: input, shape index: {}]   ;;  %s403_s4 = inlined_call_operand.vmem [shape: f32[1,16], index: 4, kind: input, shape index: {}]   ;;  %s404_s7 = inlined_call_operand.vmem [shape: f32[8,1], index: 7, kind: output, shape index: {}]  }
   0x1   :  { %282 = vmatprep.subr.bf16.mxu0 %v319_v0  ;;  %v311_v1 = vld [vmem:[%s397_s1] sm:$0xff]   ;;  %286 = vmatprep.mubr.msk.bf16.mxu0 %vm320_vm0, %v319_v0  ;;  %v312_v2 = vld [vmem:[%s397_s1 + $0x8] sm:$0xff]   ;;  %v12_v19 = vstv %s402_s6  ;;  %vm176_vm2 = vcmask 130048   ;;  %vm256_vm3 = vcmask 7168  }
   0x2   :  { %290 = vmatprep.subr.bf16.mxu1 %v319_v0  ;;  %294 = vmatprep.mubr.msk.bf16.mxu1 %vm320_vm0, %v319_v0  ;;  %v29_v3 = vld [vmem:[%s398_s0] sm:$0xff]  ;;  %v314_v6 = vld [vmem:[%s399_s3 + $0x8] sm:$0xff]   ;;  %13 = vst [vmem:[#allocation2] sm:$0x1] %v12_v19 }
   0x3   :  { %283 = vmatpush3.bf16.msra.mxu0 %v311_v1  ;;  %v30_v4 = vpack.c.bf16 %v29_v3, %v29_v3  ;;  %v313_v5 = vld [vmem:[%s399_s3] sm:$0xff]   ;;  %v168_v9 = vld [vmem:[%s400_s5 + $0x8] sm:$0xff] }
   0x4   :  { %284 = vmatprep.subr.bf16.mxu0 %v319_v0  ;;  %291 = vmatpush3.bf16.msra.mxu1 %v313_v5  ;;  %v167_v8 = vld [vmem:[%s400_s5] sm:$0xff] }
   0x5   :  { %292 = vmatprep.subr.bf16.mxu1 %v319_v0  ;;  %v306_v10 = vpack.c.bf16 %v168_v9, %v167_v8  ;;  %v262_v11 = vld [vmem:[%s401_s2] ss:$0 sm:$0xff] }
   0x6   :  { %v266_v20 = vld [vmem:[%s403_s4] ss:$0 sm:$0xff] }
   0x7   :  { %285 = vmatpush3.bf16.msra.mxu0 %v312_v2 }
   0x8   :  { %293 = vmatpush3.bf16.msra.mxu1 %v314_v6  ;;  %305 = vmatprep.subr.bf16.mxu0 %v321_v7 }
   0x9   :  { %v270_v27 = vld [vmem:[#allocation2] ss:$0 sm:$0xff] }
   0xa   :  { %287 = vmatmul.mubr.msk.bf16.vlgmr.msra.gmra.mrb[0].mxu0 %vm54_vm1, %v30_v4 }
   0xb   :  { %302 = vmatprep.mubr.msk.f32.mxu0 %vm320_vm0, %v319_v0  ;;  %307 = vmatpush3.bf16.msra.mxu0 %v306_v10 }
  0xdd   :  { %v92_v12 = vpop.f32.mrb[0].mxu0 }
  0xde   :  { %v93_v13 = vadd.f32 %v262_v11, %v92_v12  ;;  %v288_v14 = vpop.f32.mrb[1].mxu0 }
  0xdf   :  { %v95_v15 = vpop.f32.mrb[2].mxu0 }
  0xe0   :  { %v98_v16 = vmax.f32 %v93_v13, 0.0  ;;  %v289_v17 = vpop.f32.mrb[3].mxu0 }
  0xe2   :  { %v99_v18 = vpack.c.bf16 %v98_v16, %v98_v16 }
  0xe4   :  { %295 = vmatmul.mubr.msk.bf16.vlgmr.msra.gmra.mrb[0].mxu1 %vm54_vm1, %v99_v18 }
 0x1b7   :  { %v160_v21 = vpop.f32.mrb[0].mxu1 }
 0x1b8   :  { %v161_v22 = vadd.f32 %v266_v20, %v160_v21  ;;  %v296_v23 = vpop.f32.mrb[1].mxu1 }
 0x1b9   :  { %v163_v24 = vpop.f32.mrb[2].mxu1 }
 0x1ba   :  { %v166_v25 = vmax.f32 %v161_v22, 0.0  ;;  %v297_v26 = vpop.f32.mrb[3].mxu1 }
 0x1bc   :  { %303 = vmatmul.mubr.msk.f32.vlgmr.msra.gmra.mrb[4].mxu0 %vm176_vm2, %v166_v25 }
 0x28f   :  { %v246_v28 = vpop.f32.mrb[4].mxu0 }
 0x290   :  { %v247_v29 = vadd.f32 %v270_v27, %v246_v28  ;;  %v304_v30 = vpop.f32.mrb[5].mxu0 }
 0x292   :  { %v272_v31 = vmul.f32 -1.442695, %v247_v29 }
 0x294   :  { %315 = vpow2.f32 %v272_v31 }
 0x29e   :  { %v316_v32 = vpop.eup %315 }
 0x29f   :  { %v253_v33 = vadd.f32 1.0, %v316_v32 }
 0x2a1   :  { %317 = vrcp.f32 %v253_v33 }
 0x2ab   :  { %v318_v34 = vpop.eup %317 }
 0x2ac   :  { %257 = vst.msk [vmem:[%s404_s7] sm:$0xff] %vm256_vm3, %v318_v34 }

</bundles_post_ra>
